<compile_context>
chip_gen: v5e
topology: v5e:2x2
jax: 0.10.0
libtpu: 0.0.40
codegen_flags: <defaults>
</compile_context>

<pallas_src>
import functools

import jax
import jax.numpy as jnp
from jax.experimental import pallas as pl
from jax.experimental.pallas import tpu as pltpu


# ----------------------------- fused kernel ----------------------------------
def _mec_attention_kernel(x_ref, ctx_ref, wq_ref, wkv_ref, wo_ref, bo_ref,
                          o_ref, kv_ref, *, heads, dim_head):
    inner = heads * dim_head

    # KV projection (and per-head split) once per batch element; the scratch
    # persists across the q-tile grid axis, so every q tile just reads it.
    @pl.when(pl.program_id(1) == 0)
    def _():
        ctx = ctx_ref[0].astype(jnp.bfloat16)                      # (M, Dc)
        kv = jnp.dot(ctx, wkv_ref[...],
                     preferred_element_type=jnp.float32)           # (M, 2*inner) f32
        # Head split paid once per batch (not once per q tile / per head read).
        for h in range(2 * heads):                                 # static unroll
            kv_ref[h] = kv[:, h * dim_head:(h + 1) * dim_head].astype(jnp.bfloat16)

    # Q projection for this query tile (scale folded into wq at pack time).
    x = x_ref[0].astype(jnp.bfloat16)                              # (TQ, Dq)
    q = jnp.dot(x, wq_ref[...],
                preferred_element_type=jnp.float32)                # (TQ, inner) f32

    outs = []
    for h in range(heads):                                         # static unroll
        qh = q[:, h * dim_head:(h + 1) * dim_head].astype(jnp.bfloat16)  # (TQ, Dh)
        kh = kv_ref[h]                                             # (M, Dh) bf16
        vh = kv_ref[heads + h]                                     # (M, Dh) bf16

        # q @ k^T without materializing a transpose (contract last dims).
        s = jnp.einsum("nd,md->nm", qh, kh,
                       preferred_element_type=jnp.float32)         # (TQ, M) f32
        s = s - jnp.max(s, axis=-1, keepdims=True)
        p = jnp.exp(s)
        p = p * pl.reciprocal(jnp.sum(p, axis=-1, keepdims=True), approx=True)

        oh = jnp.dot(p.astype(jnp.bfloat16), vh,
                     preferred_element_type=jnp.float32)           # (TQ, Dh) f32
        outs.append(oh.astype(jnp.bfloat16))

    # Head merge + ONE full-K output projection (no serial per-head add chain).
    o = jnp.concatenate(outs, axis=-1)                             # (TQ, inner) bf16
    out = jnp.dot(o, wo_ref[...],
                  preferred_element_type=jnp.float32)              # (TQ, Dq) f32
    o_ref[0] = (out + bo_ref[...]).astype(o_ref.dtype)


# ----------------------------- wrapper ---------------------------------------
def _pick_tq(n, max_tq=512):
    """Largest query-tile size <= max_tq that divides n and keeps (8,128) tiling."""
    if n <= max_tq:
        return n
    for t in range(max_tq, 7, -1):
        if n % t == 0 and t % 8 == 0:
            return t
    return n


def pack_params(params, *, heads, dim_head):
    """One-time parameter prep: pack [Wk|Wv], fold scale into Wq, cast to bf16."""
    scale = float(dim_head) ** -0.5
    return {
        "wq": (params["to_q_w"] * scale).astype(jnp.bfloat16),            # (Dq, inner)
        "wkv": jnp.concatenate([params["to_k_w"], params["to_v_w"]],
                               axis=1).astype(jnp.bfloat16),              # (Dc, 2*inner)
        "wo": params["to_out_w"].astype(jnp.bfloat16),                    # (inner, Dq)
        "bo": params["to_out_b"].reshape(1, -1).astype(jnp.float32),      # (1, Dq)
    }


def memory_efficient_cross_attention(x, context, packed, *, heads, dim_head):
    """Fused forward pass of MemoryEfficientCrossAttention."""
    if context is None:
        context = x
    b, n, dq = x.shape
    _, m, dc = context.shape
    inner = heads * dim_head

    tq = _pick_tq(n)
    n_tiles = n // tq

    kern = functools.partial(_mec_attention_kernel, heads=heads, dim_head=dim_head)

    flops = 2 * b * (n * dq * inner + m * dc * 2 * inner
                     + 2 * heads * n * m * dim_head + n * inner * dq)
    bytes_accessed = (x.size * 4 + context.size * 4 + b * n * dq * 4
                      + packed["wq"].size * 2 + packed["wkv"].size * 2
                      + packed["wo"].size * 2 + packed["bo"].size * 4)

    return pl.pallas_call(
        kern,
        grid=(b, n_tiles),
        in_specs=[
            pl.BlockSpec((1, tq, dq), lambda i, j: (i, j, 0)),       # x (q tile)
            pl.BlockSpec((1, m, dc), lambda i, j: (i, 0, 0)),        # context (per batch)
            pl.BlockSpec((dq, inner), lambda i, j: (0, 0)),          # Wq (resident, bf16)
            pl.BlockSpec((dc, 2 * inner), lambda i, j: (0, 0)),      # [Wk|Wv] (resident, bf16)
            pl.BlockSpec((inner, dq), lambda i, j: (0, 0)),          # Wout (resident, bf16)
            pl.BlockSpec((1, dq), lambda i, j: (0, 0)),              # bout (resident, f32)
        ],
        out_specs=pl.BlockSpec((1, tq, dq), lambda i, j: (i, j, 0)),
        out_shape=jax.ShapeDtypeStruct((b, n, dq), x.dtype),
        scratch_shapes=[
            pltpu.VMEM((2 * heads, m, dim_head), jnp.bfloat16),      # per-head K|V, per batch
        ],
        compiler_params=pltpu.CompilerParams(
            dimension_semantics=("parallel", "arbitrary"),           # batch across TCs
            vmem_limit_bytes=48 * 1024 * 1024),                      # above 16/32 MiB scoped
        cost_estimate=pl.CostEstimate(flops=flops,
                                      transcendentals=b * heads * n * m,
                                      bytes_accessed=bytes_accessed),
    )(x, context, packed["wq"], packed["wkv"], packed["wo"], packed["bo"])


# ----------------------------- reference (pure JAX) ---------------------------
def reference(x, context, params, heads, dim_head):
    if context is None:
        context = x
    b, n, _ = x.shape
    m = context.shape[1]
    inner = heads * dim_head
    q = x @ params["to_q_w"]
    k = context @ params["to_k_w"]
    v = context @ params["to_v_w"]

    def split(t, length):
        return (t.reshape(b, length, heads, dim_head)
                 .transpose(0, 2, 1, 3)
                 .reshape(b * heads, length, dim_head))

    q, k, v = split(q, n), split(k, m), split(v, m)
    s = jnp.einsum("bqd,bkd->bqk", q, k) / jnp.sqrt(float(dim_head))
    p = jax.nn.softmax(s, axis=-1)
    o = jnp.einsum("bqk,bkd->bqd", p, v)
    o = (o.reshape(b, heads, n, dim_head)
          .transpose(0, 2, 1, 3)
          .reshape(b, n, inner))
    return o @ params["to_out_w"] + params["to_out_b"]


# ----------------------------- parameter init ---------------------------------
def init_params(key, query_dim, context_dim, heads, dim_head):
    inner = heads * dim_head   # module: inner_dim = 64 * heads (dim_head = 64)
    ks = jax.random.split(key, 4)
    s = 0.02
    f32 = jnp.float32
    return {
        "to_q_w": jax.random.normal(ks[0], (query_dim, inner), f32) * s,
        "to_k_w": jax.random.normal(ks[1], (context_dim, inner), f32) * s,
        "to_v_w": jax.random.normal(ks[2], (context_dim, inner), f32) * s,
        "to_out_w": jax.random.normal(ks[3], (inner, query_dim), f32) * s,
        "to_out_b": jnp.zeros((query_dim,), f32),
    }


if __name__ == "__main__":
    key = jax.random.PRNGKey(0)
    kx, kc, kp = jax.random.split(key, 3)

    B, N, M = 2, 16, 8            # batch, query seq, context seq
    QUERY_DIM, CONTEXT_DIM = 32, 16
    HEADS, DIM_HEAD = 2, 64       # inner_dim = 128

    x = jax.random.normal(kx, (B, N, QUERY_DIM), jnp.float32)
    context = jax.random.normal(kc, (B, M, CONTEXT_DIM), jnp.float32)
    params = init_params(kp, QUERY_DIM, CONTEXT_DIM, HEADS, DIM_HEAD)
    packed = pack_params(params, heads=HEADS, dim_head=DIM_HEAD)   # one-time prep

    fwd = jax.jit(functools.partial(memory_efficient_cross_attention,
                                    heads=HEADS, dim_head=DIM_HEAD))
    out = jax.block_until_ready(fwd(x, context, packed))

    ref = reference(x, context, params, HEADS, DIM_HEAD)
    assert out.shape == (B, N, QUERY_DIM) and out.dtype == jnp.float32
    assert bool(jnp.all(jnp.isfinite(out)))
    # bf16 MXU operands + approx-reciprocal softmax -> slightly loosened tolerance
    assert jnp.allclose(out, ref, rtol=2e-2, atol=1e-3), \
        float(jnp.max(jnp.abs(out - ref)))
    print("KERNEL_OK")
</pallas_src>

<mosaic_0001>
module attributes {stable_mosaic.version = 11 : i64} {
  func.func @_mec_attention_kernel(%arg0: i32, %arg1: i32, %arg2: memref<1x16x32xf32, #tpu.memory_space<vmem>>, %arg3: memref<1x8x16xf32, #tpu.memory_space<vmem>>, %arg4: memref<32x128xbf16, #tpu.memory_space<vmem>>, %arg5: memref<16x256xbf16, #tpu.memory_space<vmem>>, %arg6: memref<128x32xbf16, #tpu.memory_space<vmem>>, %arg7: memref<1x32xf32, #tpu.memory_space<vmem>>, %arg8: memref<1x16x32xf32, #tpu.memory_space<vmem>>, %arg9: memref<4x8x64xbf16, #tpu.memory_space<vmem>>) attributes {dimension_semantics = [#tpu.dimension_semantics<parallel>, #tpu.dimension_semantics<arbitrary>], iteration_bounds = array<i64: 2, 1>, scalar_prefetch = 0 : i64, scratch_operands = 1 : i64, tpu.core_type = #tpu.core_type<tc>, window_params = [{transform_indices = @transform_0, window_bounds = array<i64: 1, 16, 32>}, {transform_indices = @transform_1, window_bounds = array<i64: 1, 8, 16>}, {pipeline_mode = #tpu.pipeline_mode<synchronous>, transform_indices = @transform_2, window_bounds = array<i64: 32, 128>}, {pipeline_mode = #tpu.pipeline_mode<synchronous>, transform_indices = @transform_3, window_bounds = array<i64: 16, 256>}, {pipeline_mode = #tpu.pipeline_mode<synchronous>, transform_indices = @transform_4, window_bounds = array<i64: 128, 32>}, {pipeline_mode = #tpu.pipeline_mode<synchronous>, transform_indices = @transform_5, window_bounds = array<i64: 1, 32>}, {transform_indices = @transform_6, window_bounds = array<i64: 1, 16, 32>}]} {
    %c0_i32 = arith.constant 0 : i32
    %0 = arith.cmpi eq, %arg1, %c0_i32 : i32
    %1 = arith.extui %0 : i1 to i32
    %c0_i32_0 = arith.constant 0 : i32
    %2 = arith.cmpi ne, %1, %c0_i32_0 : i32
    scf.if %2 {
      %c0_30 = arith.constant 0 : index
      %c0_31 = arith.constant 0 : index
      %c0_32 = arith.constant 0 : index
      %57 = vector.load %arg3[%c0_30, %c0_31, %c0_32] : memref<1x8x16xf32, #tpu.memory_space<vmem>>, vector<1x8x16xf32>
      %58 = vector.shape_cast %57 : vector<1x8x16xf32> to vector<8x16xf32>
      %59 = arith.truncf %58 : vector<8x16xf32> to vector<8x16xbf16>
      %c0_33 = arith.constant 0 : index
      %c0_34 = arith.constant 0 : index
      %60 = vector.load %arg5[%c0_33, %c0_34] : memref<16x256xbf16, #tpu.memory_space<vmem>>, vector<16x256xbf16>
      %cst_35 = arith.constant dense<0.000000e+00> : vector<8x256xf32>
      %61 = tpu.matmul %59, %60, %cst_35 {dimension_numbers = #tpu.dot_dimension_numbers<[1], [0], [0], [1], [0, 0, 1, 1], [], []>} : vector<8x16xbf16>, vector<16x256xbf16>, vector<8x256xf32> -> vector<8x256xf32>
      %62 = vector.extract_strided_slice %61 {offsets = [0, 0], sizes = [8, 64], strides = [1, 1]} : vector<8x256xf32> to vector<8x64xf32>
      %63 = arith.truncf %62 : vector<8x64xf32> to vector<8x64xbf16>
      %c0_36 = arith.constant 0 : index
      %c0_37 = arith.constant 0 : index
      %c0_38 = arith.constant 0 : index
      %64 = vector.load %arg9[%c0_36, %c0_37, %c0_38] : memref<4x8x64xbf16, #tpu.memory_space<vmem>>, vector<1x8x64xbf16>
      %65 = vector.shape_cast %64 : vector<1x8x64xbf16> to vector<8x64xbf16>
      %66 = vector.shape_cast %63 : vector<8x64xbf16> to vector<1x8x64xbf16>
      tpu.vector_store %arg9[%c0_36, %c0_37, %c0_38], %66 {strides = array<i32>} : memref<4x8x64xbf16, #tpu.memory_space<vmem>>, vector<1x8x64xbf16>,
      %67 = vector.extract_strided_slice %61 {offsets = [0, 64], sizes = [8, 64], strides = [1, 1]} : vector<8x256xf32> to vector<8x64xf32>
      %68 = arith.truncf %67 : vector<8x64xf32> to vector<8x64xbf16>
      %c1_39 = arith.constant 1 : index
      %c0_40 = arith.constant 0 : index
      %c0_41 = arith.constant 0 : index
      %69 = vector.load %arg9[%c1_39, %c0_40, %c0_41] : memref<4x8x64xbf16, #tpu.memory_space<vmem>>, vector<1x8x64xbf16>
      %70 = vector.shape_cast %69 : vector<1x8x64xbf16> to vector<8x64xbf16>
      %71 = vector.shape_cast %68 : vector<8x64xbf16> to vector<1x8x64xbf16>
      tpu.vector_store %arg9[%c1_39, %c0_40, %c0_41], %71 {strides = array<i32>} : memref<4x8x64xbf16, #tpu.memory_space<vmem>>, vector<1x8x64xbf16>,
      %72 = vector.extract_strided_slice %61 {offsets = [0, 128], sizes = [8, 64], strides = [1, 1]} : vector<8x256xf32> to vector<8x64xf32>
      %73 = arith.truncf %72 : vector<8x64xf32> to vector<8x64xbf16>
      %c2_42 = arith.constant 2 : index
      %c0_43 = arith.constant 0 : index
      %c0_44 = arith.constant 0 : index
      %74 = vector.load %arg9[%c2_42, %c0_43, %c0_44] : memref<4x8x64xbf16, #tpu.memory_space<vmem>>, vector<1x8x64xbf16>
      %75 = vector.shape_cast %74 : vector<1x8x64xbf16> to vector<8x64xbf16>
      %76 = vector.shape_cast %73 : vector<8x64xbf16> to vector<1x8x64xbf16>
      tpu.vector_store %arg9[%c2_42, %c0_43, %c0_44], %76 {strides = array<i32>} : memref<4x8x64xbf16, #tpu.memory_space<vmem>>, vector<1x8x64xbf16>,
      %77 = vector.extract_strided_slice %61 {offsets = [0, 192], sizes = [8, 64], strides = [1, 1]} : vector<8x256xf32> to vector<8x64xf32>
      %78 = arith.truncf %77 : vector<8x64xf32> to vector<8x64xbf16>
      %c3_45 = arith.constant 3 : index
      %c0_46 = arith.constant 0 : index
      %c0_47 = arith.constant 0 : index
      %79 = vector.load %arg9[%c3_45, %c0_46, %c0_47] : memref<4x8x64xbf16, #tpu.memory_space<vmem>>, vector<1x8x64xbf16>
      %80 = vector.shape_cast %79 : vector<1x8x64xbf16> to vector<8x64xbf16>
      %81 = vector.shape_cast %78 : vector<8x64xbf16> to vector<1x8x64xbf16>
      tpu.vector_store %arg9[%c3_45, %c0_46, %c0_47], %81 {strides = array<i32>} : memref<4x8x64xbf16, #tpu.memory_space<vmem>>, vector<1x8x64xbf16>,
    } else {
    }
    %c0 = arith.constant 0 : index
    %c0_1 = arith.constant 0 : index
    %c0_2 = arith.constant 0 : index
    %3 = vector.load %arg2[%c0, %c0_1, %c0_2] : memref<1x16x32xf32, #tpu.memory_space<vmem>>, vector<1x16x32xf32>
    %4 = vector.shape_cast %3 : vector<1x16x32xf32> to vector<16x32xf32>
    %5 = arith.truncf %4 : vector<16x32xf32> to vector<16x32xbf16>
    %c0_3 = arith.constant 0 : index
    %c0_4 = arith.constant 0 : index
    %6 = vector.load %arg4[%c0_3, %c0_4] : memref<32x128xbf16, #tpu.memory_space<vmem>>, vector<32x128xbf16>
    %cst = arith.constant dense<0.000000e+00> : vector<16x128xf32>
    %7 = tpu.matmul %5, %6, %cst {dimension_numbers = #tpu.dot_dimension_numbers<[1], [0], [0], [1], [0, 0, 1, 1], [], []>} : vector<16x32xbf16>, vector<32x128xbf16>, vector<16x128xf32> -> vector<16x128xf32>
    %8 = vector.extract_strided_slice %7 {offsets = [0, 0], sizes = [16, 64], strides = [1, 1]} : vector<16x128xf32> to vector<16x64xf32>
    %9 = arith.truncf %8 : vector<16x64xf32> to vector<16x64xbf16>
    %c0_5 = arith.constant 0 : index
    %c0_6 = arith.constant 0 : index
    %c0_7 = arith.constant 0 : index
    %10 = vector.load %arg9[%c0_5, %c0_6, %c0_7] : memref<4x8x64xbf16, #tpu.memory_space<vmem>>, vector<1x8x64xbf16>
    %11 = vector.shape_cast %10 : vector<1x8x64xbf16> to vector<8x64xbf16>
    %c2 = arith.constant 2 : index
    %c0_8 = arith.constant 0 : index
    %c0_9 = arith.constant 0 : index
    %12 = vector.load %arg9[%c2, %c0_8, %c0_9] : memref<4x8x64xbf16, #tpu.memory_space<vmem>>, vector<1x8x64xbf16>
    %13 = vector.shape_cast %12 : vector<1x8x64xbf16> to vector<8x64xbf16>
    "tpu.trace_start"() <{level = 10 : i32, message = "nd,md->nm"}> : () -> ()
    %cst_10 = arith.constant dense<0.000000e+00> : vector<16x8xf32>
    %14 = tpu.matmul %9, %11, %cst_10 {dimension_numbers = #tpu.dot_dimension_numbers<[1], [1], [0], [0], [0, 0, 1, 0], [], []>} : vector<16x64xbf16>, vector<8x64xbf16>, vector<16x8xf32> -> vector<16x8xf32>
    "tpu.trace_stop"() : () -> ()
    %cst_11 = arith.constant dense<0xFF800000> : vector<16xf32>
    %15 = vector.multi_reduction <maximumf>, %14, %cst_11 [1] : vector<16x8xf32> to vector<16xf32>
    %16 = vector.shape_cast %15 : vector<16xf32> to vector<16x1xf32>
    %17 = vector.broadcast %16 : vector<16x1xf32> to vector<16x8xf32>
    %18 = arith.subf %14, %17 : vector<16x8xf32>
    %19 = math.exp %18 : vector<16x8xf32>
    %cst_12 = arith.constant dense<0.000000e+00> : vector<16xf32>
    %20 = vector.multi_reduction <add>, %19, %cst_12 [1] : vector<16x8xf32> to vector<16xf32>
    %21 = vector.shape_cast %20 : vector<16xf32> to vector<16x1xf32>
    %22 = tpu.reciprocal %21 {approx = true} : vector<16x1xf32> -> vector<16x1xf32>
    %23 = vector.broadcast %22 : vector<16x1xf32> to vector<16x8xf32>
    %24 = arith.mulf %19, %23 : vector<16x8xf32>
    %25 = arith.truncf %24 : vector<16x8xf32> to vector<16x8xbf16>
    %cst_13 = arith.constant dense<0.000000e+00> : vector<16x64xf32>
    %26 = tpu.matmul %25, %13, %cst_13 {dimension_numbers = #tpu.dot_dimension_numbers<[1], [0], [0], [1], [0, 0, 1, 1], [], []>} : vector<16x8xbf16>, vector<8x64xbf16>, vector<16x64xf32> -> vector<16x64xf32>
    %27 = arith.truncf %26 : vector<16x64xf32> to vector<16x64xbf16>
    %28 = vector.extract_strided_slice %7 {offsets = [0, 64], sizes = [16, 64], strides = [1, 1]} : vector<16x128xf32> to vector<16x64xf32>
    %29 = arith.truncf %28 : vector<16x64xf32> to vector<16x64xbf16>
    %c1 = arith.constant 1 : index
    %c0_14 = arith.constant 0 : index
    %c0_15 = arith.constant 0 : index
    %30 = vector.load %arg9[%c1, %c0_14, %c0_15] : memref<4x8x64xbf16, #tpu.memory_space<vmem>>, vector<1x8x64xbf16>
    %31 = vector.shape_cast %30 : vector<1x8x64xbf16> to vector<8x64xbf16>
    %c3 = arith.constant 3 : index
    %c0_16 = arith.constant 0 : index
    %c0_17 = arith.constant 0 : index
    %32 = vector.load %arg9[%c3, %c0_16, %c0_17] : memref<4x8x64xbf16, #tpu.memory_space<vmem>>, vector<1x8x64xbf16>
    %33 = vector.shape_cast %32 : vector<1x8x64xbf16> to vector<8x64xbf16>
    "tpu.trace_start"() <{level = 10 : i32, message = "nd,md->nm"}> : () -> ()
    %cst_18 = arith.constant dense<0.000000e+00> : vector<16x8xf32>
    %34 = tpu.matmul %29, %31, %cst_18 {dimension_numbers = #tpu.dot_dimension_numbers<[1], [1], [0], [0], [0, 0, 1, 0], [], []>} : vector<16x64xbf16>, vector<8x64xbf16>, vector<16x8xf32> -> vector<16x8xf32>
    "tpu.trace_stop"() : () -> ()
    %cst_19 = arith.constant dense<0xFF800000> : vector<16xf32>
    %35 = vector.multi_reduction <maximumf>, %34, %cst_19 [1] : vector<16x8xf32> to vector<16xf32>
    %36 = vector.shape_cast %35 : vector<16xf32> to vector<16x1xf32>
    %37 = vector.broadcast %36 : vector<16x1xf32> to vector<16x8xf32>
    %38 = arith.subf %34, %37 : vector<16x8xf32>
    %39 = math.exp %38 : vector<16x8xf32>
    %cst_20 = arith.constant dense<0.000000e+00> : vector<16xf32>
    %40 = vector.multi_reduction <add>, %39, %cst_20 [1] : vector<16x8xf32> to vector<16xf32>
    %41 = vector.shape_cast %40 : vector<16xf32> to vector<16x1xf32>
    %42 = tpu.reciprocal %41 {approx = true} : vector<16x1xf32> -> vector<16x1xf32>
    %43 = vector.broadcast %42 : vector<16x1xf32> to vector<16x8xf32>
    %44 = arith.mulf %39, %43 : vector<16x8xf32>
    %45 = arith.truncf %44 : vector<16x8xf32> to vector<16x8xbf16>
    %cst_21 = arith.constant dense<0.000000e+00> : vector<16x64xf32>
    %46 = tpu.matmul %45, %33, %cst_21 {dimension_numbers = #tpu.dot_dimension_numbers<[1], [0], [0], [1], [0, 0, 1, 1], [], []>} : vector<16x8xbf16>, vector<8x64xbf16>, vector<16x64xf32> -> vector<16x64xf32>
    %47 = arith.truncf %46 : vector<16x64xf32> to vector<16x64xbf16>
    %48 = tpu.concatenate %27, %47 in 1 : vector<16x64xbf16>, vector<16x64xbf16> -> vector<16x128xbf16>
    %c0_22 = arith.constant 0 : index
    %c0_23 = arith.constant 0 : index
    %49 = vector.load %arg6[%c0_22, %c0_23] : memref<128x32xbf16, #tpu.memory_space<vmem>>, vector<128x32xbf16>
    %cst_24 = arith.constant dense<0.000000e+00> : vector<16x32xf32>
    %50 = tpu.matmul %48, %49, %cst_24 {dimension_numbers = #tpu.dot_dimension_numbers<[1], [0], [0], [1], [0, 0, 1, 1], [], []>} : vector<16x128xbf16>, vector<128x32xbf16>, vector<16x32xf32> -> vector<16x32xf32>
    %c0_25 = arith.constant 0 : index
    %c0_26 = arith.constant 0 : index
    %51 = vector.load %arg7[%c0_25, %c0_26] : memref<1x32xf32, #tpu.memory_space<vmem>>, vector<1x32xf32>
    %52 = vector.broadcast %51 : vector<1x32xf32> to vector<16x32xf32>
    %53 = arith.addf %50, %52 : vector<16x32xf32>
    %c0_27 = arith.constant 0 : index
    %c0_28 = arith.constant 0 : index
    %c0_29 = arith.constant 0 : index
    %54 = vector.load %arg8[%c0_27, %c0_28, %c0_29] : memref<1x16x32xf32, #tpu.memory_space<vmem>>, vector<1x16x32xf32>
    %55 = vector.shape_cast %54 : vector<1x16x32xf32> to vector<16x32xf32>
    %56 = vector.shape_cast %53 : vector<16x32xf32> to vector<1x16x32xf32>
    tpu.vector_store %arg8[%c0_27, %c0_28, %c0_29], %56 {strides = array<i32>} : memref<1x16x32xf32, #tpu.memory_space<vmem>>, vector<1x16x32xf32>,
    return
  }
  func.func @transform_0(%arg0: i32, %arg1: i32) -> (i32, i32, i32) {
    %c0_i32 = arith.constant 0 : i32
    %c0_i32_0 = arith.constant 0 : i32
    return %arg0, %arg1, %c0_i32 : i32, i32, i32
  }
  func.func @transform_1(%arg0: i32, %arg1: i32) -> (i32, i32, i32) {
    %c0_i32 = arith.constant 0 : i32
    %c0_i32_0 = arith.constant 0 : i32
    %c0_i32_1 = arith.constant 0 : i32
    return %arg0, %c0_i32, %c0_i32_0 : i32, i32, i32
  }
  func.func @transform_2(%arg0: i32, %arg1: i32) -> (i32, i32) {
    %c0_i32 = arith.constant 0 : i32
    %c0_i32_0 = arith.constant 0 : i32
    %c0_i32_1 = arith.constant 0 : i32
    return %c0_i32, %c0_i32_0 : i32, i32
  }
  func.func @transform_3(%arg0: i32, %arg1: i32) -> (i32, i32) {
    %c0_i32 = arith.constant 0 : i32
    %c0_i32_0 = arith.constant 0 : i32
    %c0_i32_1 = arith.constant 0 : i32
    return %c0_i32, %c0_i32_0 : i32, i32
  }
  func.func @transform_4(%arg0: i32, %arg1: i32) -> (i32, i32) {
    %c0_i32 = arith.constant 0 : i32
    %c0_i32_0 = arith.constant 0 : i32
    %c0_i32_1 = arith.constant 0 : i32
    return %c0_i32, %c0_i32_0 : i32, i32
  }
  func.func @transform_5(%arg0: i32, %arg1: i32) -> (i32, i32) {
    %c0_i32 = arith.constant 0 : i32
    %c0_i32_0 = arith.constant 0 : i32
    %c0_i32_1 = arith.constant 0 : i32
    return %c0_i32, %c0_i32_0 : i32, i32
  }
  func.func @transform_6(%arg0: i32, %arg1: i32) -> (i32, i32, i32) {
    %c0_i32 = arith.constant 0 : i32
    %c0_i32_0 = arith.constant 0 : i32
    return %arg0, %arg1, %c0_i32 : i32, i32, i32
  }
}

</mosaic_0001>

<bundles_post_ra>
// kernel: memory_efficient_cross_attention.1
= control target key start
LH: loop header
LB: loop body
LE: loop exit
PB: predicated region body
PF: predicated region fallthrough
CT: control target
= control target key end

     0   :  { %11 = vsyncpa [#allocation4], 0  ;;  %s1204_s0 = inlined_call_operand.vmem [shape: f32[2,16,32], index: 0, kind: input, shape index: {}]   ;;  %s1205_s1 = inlined_call_operand.vmem [shape: f32[2,8,16], index: 1, kind: input, shape index: {}]   ;;  %s1206_s2 = inlined_call_operand.vmem [shape: bf16[32,128], index: 2, kind: input, shape index: {}]   ;;  %s1207_s3 = inlined_call_operand.vmem [shape: bf16[16,256], index: 3, kind: input, shape index: {}]   ;;  %s1208_s4 = inlined_call_operand.vmem [shape: bf16[128,32], index: 4, kind: input, shape index: {}]   ;;  %s1209_s5 = inlined_call_operand.vmem [shape: f32[1,32], index: 5, kind: input, shape index: {}]   ;;  %s1210_s6 = inlined_call_operand.hbm [shape: f32[2,16,32], index: 6, kind: output, shape index: {}]  }
   0x1   :  { %13 = vsyncpa [#allocation4 + $0x1], 0  ;;  %s1031_s21 = smov 0   ;;  %s1033_s22 = smov 0  }
   0x2   :  { %s1035_s23 = smov 0   ;;  %s1037_s24 = smov 0  }
   0x3   :  { %s1039_s25 = smov 0   ;;  %s1041_s26 = smov 0  }
   0x4 LB: > { %s755_s27 = sadd.s32 4294967295, %s991_s26   ;;  %s756_s28 = sadd.s32 4294967294, %s991_s26   ;;  %s991_s26 = sphi %s1041_s26, %s19_s26   ;;  %s987_s25 = sphi %s1039_s25, %s1217_s25   ;;  %s983_s24 = sphi %s1037_s24, %s1216_s24   ;;  %s979_s23 = sphi %s1035_s23, %s1215_s23   ;;  %s975_s22 = sphi %s1033_s22, %s1214_s22   ;;  %s971_s21 = sphi %s1031_s21, %s1213_s21  }
   0x5   : > { %s31_s29 = sadd.s32 1, %s987_s25  ;;  %s178_s30 = sadd.s32 1, %s979_s23 }
   0x6   : > { %p33_p0 = scmp.ge.s32.totalorder %s31_s29, 2  ;;  %p188_p1 = scmp.ne.s32.totalorder %s979_s23, %s975_s22 }
   0x7   : > { %p189_p2 = scmp.eq.s32.totalorder %s755_s27, 1  ;;  %p194_p3 = scmp.ne.s32.totalorder %s975_s22, %s971_s21 }
   0x8   : > { %s1219_s29 = smov (%p33_p0, %s31_s29), 0  ;;  %p195_p5 = scmp.eq.s32.totalorder %s756_s28, 1 }
   0x9   : > { %p1071_p4 = por %p189_p2, %p188_p1  ;;  %s173_s8 = ssub.s32 %s987_s25, %s1219_s29 }
   0xa   : > { %p759_p6 = scmp.ge.s32.totalorder %s991_s26, 1  ;;  %p176_p7 = scmp.eq.s32.totalorder %s173_s8, 0 }
   0xb   : > { %p1078_p8 = por %p195_p5, %p194_p3  ;;  %p245_p9 = scmp.lt.s32.totalorder %s991_s26, 3 }
   0xc   : > { %s1084_s10 = scalar_select %p176_p7, %s979_s23, %s178_s30  }
   0xd   : > { %p246_p10 = pnand %p759_p6, %p245_p9 }
   0xe   : > { %p284_p11 = scmp.lt.s32.totalorder (!%p246_p10), %s983_s24, 1  ;;  %s993_s18 = smov (!%p246_p10), 64  }
   0xf   : > { %249 = sbr.rel (%p246_p10) target bundleno = 1061 (0x425), region = 44  ;;  %s280_s28 = sand.u32 (!%p246_p10), 1, %s975_s22  }
  0x10   : > { %s760_s30 = sshll.u32 (!%p246_p10), %s280_s28, 4  ;;  %s837_s12 = sshll.u32 (!%p246_p10), %s983_s24, 4 }
  0x11   : > { %s660_s14 = scalar_lea.hbm (!%p246_p10), %s1210_s6, %s837_s12  ;;  %s282_s15 = scalar_lea.vmem (!%p246_p10), [#allocation3], %s760_s30 }
  0x12   : > { %s661_s16 = sshll.u32 (!%p246_p10), %s282_s15, 4  ;;  %s663_s17 = sshll.u32 (!%p246_p10), %s660_s14, 4  ;;  %s662_s16 = int_to_ptr.vmem [resolvable:$true] %s661_s16  ;;  %s664_s17 = int_to_ptr.hbm [resolvable:$true] %s663_s17 }
  0x14   : > { %v828_v0 = vld [vmem:[%s1206_s2 + $0x8] sm:$0xff]  ;;  %v766_v1 = vld [vmem:[%s1207_s3] sm:$0xf]  ;;  %s285_s19 = scalar_select %p284_p11, %s983_s24, 1  ;;  %vm317_vm0 = vcmask 130048   ;;  %vm384_vm1 = vcmask 261120  }
  0x15   : > { %v826_v2 = vld [vmem:[%s1207_s3 + $0x4] sm:$0xf0]  ;;  %394 = vmatpush.bf16.msra.mxu2 %v828_v0  ;;  %v827_v4 = vld [vmem:[%s1206_s2] sm:$0xff]  ;;  %v768_v11 = vld [vmem:[%s1207_s3 + $0x8] sm:$0xf0]  ;;  %vm348_vm2 = vcmask 519168  }
  0x16   : > { %v767_v3 = vor.u32 %v826_v2, %v766_v1  ;;  %s763_s20 = sshll.u32 %s285_s19, 3  ;;  %s824_s27 = sshll.u32 %s285_s19, 4  ;;  %v825_v10 = vld [vmem:[%s1207_s3 + $0x4] sm:$0xf]  ;;  %vm406_vm3 = vcmask 523264   ;;  %vm427_vm4 = vcmask 64512  }
  0x17   : > { %s296_s8 = scalar_lea.vmem %s1205_s1, %s763_s20  ;;  %s291_s13 = scalar_lea.vmem %s1204_s0, %s824_s27  ;;  %v771_v12 = vor.u32 %v825_v10, %v768_v11  ;;  %vm454_vm5 = vcmask 1043456   ;;  %v836_v11 = vld [vmem:[%s1208_s4 + $0x38] sm:$0xff] }
  0x18   : > { %328 = vmatpush.bf16.msra.mxu0 %v767_v3  ;;  %v303_v5 = vld [vmem:[%s296_s8] sm:$0xff]  ;;  %v366_v7 = vld [vmem:[%s291_s13 + $0x8] sm:$0xff]  ;;  %630 = vmatpush.bf16.msra.mxu3 %v836_v11  ;;  %s647_s19 = scalar_lea.sflag [#allocation4], %s280_s28  ;;  %s927_s24 = sshra.s32 %s664_s17, 4  ;;  %s928_s24 = int_to_ptr.hbm [resolvable:$true] %s927_s24 }
  0x19   : > { %395 = vmatpush.bf16.msra.mxu2 %v827_v4  ;;  %v365_v6 = vld [vmem:[%s291_s13] sm:$0xff]  ;;  %v304_v8 = vpack.c.bf16 %v303_v5, %v303_v5  ;;  %341 = vmatpush.bf16.msra.mxu1 %v771_v12  ;;  %v835_v12 = vld [vmem:[%s1208_s4 + $0x30] sm:$0xff]  ;;  %s929_s20 = scalar_lea.hbm %s928_s24, 16  ;;  %s933_s8 = scalar_lea.hbm %s1210_s6, 32 }
  0x1a   : > { %v367_v9 = vpack.c.bf16 %v366_v7, %v365_v6  ;;  %p930_p12 = scmp.ne.s32.totalorder %s928_s24, %s929_s20  ;;  %p934_p1 = scmp.lt.s32.totalorder %s928_s24, %s1210_s6 }
  0x1b   : > { %772 = vmatmul.msk.bf16.vlgmr.msra.gmra.mxu0 %vm317_vm0, %v304_v8  ;;  %p935_p2 = scmp.lt.s32.totalorder %s933_s8, %s929_s20 }
  0x1c   : > { %782 = vmatmul.msk.bf16.vlgmr.msra.gmra.mxu2 %vm384_vm1, %v367_v9  ;;  %773 = vmatmul.msk.bf16.vlgmr.msra.gmra.mxu1 %vm317_vm0, %v304_v8  ;;  %p931_p13 = pnand %p930_p12, %p1071_p4 }
  0x1d   : > { %631 = vmatpush.bf16.msra.mxu3 %v835_v12  ;;  %p936_p3 = por %p935_p2, %p934_p1 }
  0x1e   : > { %p932_p0 = pneg %p931_p13 }
  0x20   : > { %p937_p5 = pnand %p936_p3, %p932_p0 }
  0x98   : > { %v330_v13 = vpop.f32.mrf.mxu0 }
  0x99   : > { %v347_v14 = vpack.c.bf16 %v330_v13, %v330_v13  ;;  %v343_v22 = vpop.f32.mrf.mxu1  ;;  %v834_v13 = vld [vmem:[%s1208_s4 + $0x28] sm:$0xff] }
  0x9a   : > { %v356_v23 = vpack.c.bf16 %v343_v22, %v343_v22  ;;  %632 = vmatpush.bf16.msra.mxu3 %v834_v13  ;;  %v829_v22 = vld [vmem:[%s1208_s4] sm:$0xff] }
  0x9b   : > { %349 = vst.msk [vmem:[#allocation2] sm:$0xf] %vm348_vm2, %v347_v14  ;;  %351 = vrot.lane.b32.xlu0 %v347_v14, %s993_s18  ;;  %v833_v14 = vld [vmem:[%s1208_s4 + $0x20] sm:$0xff] }
  0x9c   : > { %358 = vst.msk [vmem:[#allocation2 + $0x8] sm:$0xf] %vm348_vm2, %v356_v23 }
  0x9e   : > { %633 = vmatpush.bf16.msra.mxu3 %v833_v14 }
  0x9f   : > { %v397_v15 = vpop.f32.mrf.mxu2 }
  0xa0   : > { %v332_v16 = vpop.f32.mrf.mxu0 }
  0xa1   : > { %v345_v26 = vpop.f32.mrf.mxu1 }
  0xa2   : > { %v403_v17 = vld [vmem:[#allocation2] sm:$0xf] }
  0xa3   : > { %v411_v18 = vsel %vm406_vm3, %v403_v17, 0  ;;  %v405_v32 = vld [vmem:[#allocation2 + $0x8] sm:$0xf]  ;;  %v831_v17 = vld [vmem:[%s1208_s4 + $0x10] sm:$0xff] }
  0xa4   : > { %420 = vmatpush.bf16.xpose.msrb.mxu0 %v411_v18  ;;  %v456_v33 = vsel %vm454_vm5, %v405_v32, 0  ;;  %v830_v18 = vld [vmem:[%s1208_s4 + $0x8] sm:$0xff] }
  0xa7   : > { %v399_v19 = vpop.f32.mrf.mxu2 }
  0xa8   : > { %v402_v20 = vpack.c.bf16 %v399_v19, %v397_v15  ;;  %v832_v15 = vld [vmem:[%s1208_s4 + $0x18] sm:$0xff] }
  0xa9   : > { %634 = vmatpush.bf16.msra.mxu3 %v832_v15 }
  0xaa   : > { %479 = vrot.lane.b32.xlu0 %v402_v20, %s993_s18 }
  0xab   : > { %783 = vmatmul.msk.bf16.vlgmr.msrb.gmra.mxu0 %vm406_vm3, %v402_v20 }
  0xac   : > { %465 = vmatpush.bf16.msra.mxu0 %v456_v33 }
  0xad   : > { %635 = vmatpush.bf16.msra.mxu3 %v831_v17 }
  0xb1   : > { %636 = vmatpush.bf16.msra.mxu3 %v830_v18 }
  0xb2   : > { %360 = vrot.lane.b32.xlu0 %v356_v23, %s993_s18 }
  0xb5   : > { %637 = vmatpush.bf16.msra.mxu3 %v829_v22 }
 0x10d   : > { %v352_v21 = vpop.permute.xlu0 %351 }
 0x10e   : > { %355 = vst.msk [vmem:[#allocation2 + $0x4] sm:$0xf] %vm348_vm2, %v352_v21 }
 0x115   : > { %v475_v24 = vld [vmem:[#allocation2 + $0x4] sm:$0xf] }
 0x116   : > { %v485_v25 = vsel %vm406_vm3, %v475_v24, 0 }
 0x117   : > { %494 = vmatpush.bf16.xpose.msrb.mxu1 %v485_v25 }
 0x11c   : > { %v480_v27 = vpop.permute.xlu0 %479 }
 0x11e   : > { %785 = vmatmul.msk.bf16.vlgmr.msrb.gmra.mxu1 %vm406_vm3, %v480_v27 }
 0x124   : > { %v361_v34 = vpop.permute.xlu0 %360 }
 0x125   : > { %364 = vst.msk [vmem:[#allocation2 + $0xc] sm:$0xf] %vm348_vm2, %v361_v34 }
 0x128   : > { %v422_v28 = vpop.f32.mrf.mxu0 }
 0x129   : > { %v428_v29 = vsel %vm427_vm4, %v422_v28, -inf }
 0x12a   : > { %429 = vmax.xlane.f32.xlu2 %v428_v29 }
 0x12c   : > { %v477_v44 = vld [vmem:[#allocation2 + $0xc] sm:$0xf] }
 0x12d   : > { %v528_v45 = vsel %vm454_vm5, %v477_v44, 0 }
 0x12e   : > { %537 = vmatpush.bf16.msrb.mxu2 %v528_v45 }
 0x130   : > { %v424_v30 = vpop.f32.mrf.mxu0 }
 0x131   : > { %v431_v31 = vsel %vm427_vm4, %v424_v30, -inf }
 0x132   : > { %432 = vmax.xlane.f32.xlu2 %v431_v31 }
 0x19b   : > { %v496_v35 = vpop.f32.mrf.mxu1 }
 0x19c   : > { %v501_v36 = vsel %vm427_vm4, %v496_v35, -inf }
 0x19d   : > { %502 = vmax.xlane.f32.xlu1 %v501_v36  ;;  %v430_v37 = vpop.xlane.xlu2 %429 }
 0x19e   : > { %v434_v38 = vsub.f32 %v422_v28, %v430_v37 }
 0x1a0   : > { %v436_v39 = vmul.f32 1.442695, %v434_v38 }
 0x1a2   : > { %897 = vpow2.f32 %v436_v39 }
 0x1a3   : > { %v498_v40 = vpop.f32.mrf.mxu1 }
 0x1a4   : > { %v504_v41 = vsel %vm427_vm4, %v498_v40, -inf }
 0x1a5   : > { %505 = vmax.xlane.f32.xlu1 %v504_v41  ;;  %v433_v46 = vpop.xlane.xlu2 %432 }
 0x1a6   : > { %v435_v49 = vsub.f32 %v424_v30, %v433_v46 }
 0x1a8   : > { %v898_v42 = vpop.eup %897  ;;  %v438_v51 = vmul.f32 1.442695, %v435_v49 }
 0x1a9   : > { %v440_v43 = vsel %vm427_vm4, %v898_v42, 0.0 }
 0x1aa   : > { %441 = vadd.xlane.f32.xlu0 %v440_v43 }
 0x210   : > { %v503_v47 = vpop.xlane.xlu1 %502 }
 0x211   : > { %v507_v48 = vsub.f32 %v496_v35, %v503_v47  ;;  %v896_v35 = vld [vmem:[%s1209_s5] ss:$0 sm:$0xff] }
 0x213   : > { %v509_v50 = vmul.f32 1.442695, %v507_v48 }
 0x215   : > { %899 = vpow2.f32 %v509_v50 }
 0x216   : > { %901 = vpow2.f32 %v438_v51 }
 0x218   : > { %v506_v52 = vpop.xlane.xlu1 %505 }
 0x219   : > { %v508_v53 = vsub.f32 %v498_v40, %v506_v52 }
 0x21b   : > { %v900_v54 = vpop.eup %899  ;;  %v511_v55 = vmul.f32 1.442695, %v508_v53 }
 0x21c   : > { %v513_v56 = vsel %vm427_vm4, %v900_v54, 0.0  ;;  %v902_v57 = vpop.eup %901 }
 0x21d   : > { %903 = vpow2.f32 %v511_v55  ;;  %514 = vadd.xlane.f32.xlu1 %v513_v56  ;;  %v443_v60 = vsel %vm427_vm4, %v902_v57, 0.0  ;;  %v442_v62 = vpop.xlane.xlu0 %441 }
 0x21e   : > { %905 = vrcp.f32 %v442_v62 }
 0x223   : > { %v904_v58 = vpop.eup %903 }
 0x224   : > { %v516_v59 = vsel %vm427_vm4, %v904_v58, 0.0  ;;  %v906_v1 = vpop.eup %905 }
 0x225   : > { %517 = vadd.xlane.f32.xlu2 %v516_v59  ;;  %444 = vadd.xlane.f32.xlu1 %v443_v60  ;;  %v448_v5 = vmul.f32 %v906_v1, %v898_v42 }
 0x290   : > { %v515_v61 = vpop.xlane.xlu1 %514 }
 0x291   : > { %907 = vrcp.f32 %v515_v61 }
 0x297   : > { %v908_v2 = vpop.eup %907 }
 0x298   : > { %v445_v63 = vpop.xlane.xlu1 %444  ;;  %v518_v0 = vpop.xlane.xlu2 %517  ;;  %v521_v7 = vmul.f32 %v908_v2, %v900_v54 }
 0x299   : > { %909 = vrcp.f32 %v445_v63 }
 0x29a   : > { %911 = vrcp.f32 %v518_v0 }
 0x29f   : > { %v910_v3 = vpop.eup %909 }
 0x2a0   : > { %v912_v4 = vpop.eup %911  ;;  %v449_v6 = vmul.f32 %v910_v3, %v902_v57 }
 0x2a1   : > { %v522_v8 = vmul.f32 %v912_v4, %v904_v58 }
 0x2a2   : > { %v450_v9 = vpack.c.bf16 %v449_v6, %v448_v5 }
 0x2a3   : > { %v523_v10 = vpack.c.bf16 %v522_v8, %v521_v7 }
 0x2a4   : > { %784 = vmatmul.msk.bf16.vlgmr.msra.gmra.mxu0 %vm427_vm4, %v450_v9 }
 0x2a5   : > { %786 = vmatmul.msk.bf16.vlgmr.msrb.gmra.mxu2 %vm427_vm4, %v523_v10 }
 0x321   : > { %v467_v26 = vpop.f32.mrf.mxu0 }
 0x322   : > { %v472_v29 = vpack.c.bf16 %v467_v26, %v467_v26 }
 0x324   : > { %v548_v31 = vunpack.c.l.b16 %v472_v29 }
 0x328   : > { %v539_v16 = vpop.f32.mrf.mxu2 }
 0x329   : > { %v544_v19 = vpack.c.bf16 %v539_v16, %v539_v16  ;;  %v469_v27 = vpop.f32.mrf.mxu0 }
 0x32a   : > { %v473_v28 = vpack.c.bf16 %v469_v27, %v469_v27 }
 0x32b   : > { %v553_v23 = vunpack.c.l.b16 %v544_v19 }
 0x32c   : > { %v549_v30 = vunpack.c.l.b16 %v473_v28 }
 0x32e   : > { %v550_v32 = vpack.c.b16 %v549_v30, %v548_v31 }
 0x330   : > { %v541_v20 = vpop.f32.mrf.mxu2 }
 0x331   : > { %v545_v21 = vpack.c.bf16 %v541_v20, %v541_v20 }
 0x333   : > { %v554_v24 = vunpack.c.l.b16 %v545_v21 }
 0x335   : > { %v555_v25 = vpack.c.b16 %v554_v24, %v553_v23 }
 0x337   : > { %556 = vrot.lane.b32.xlu2 %v555_v25, %s993_s18 }
 0x391   : > { %v557_v33 = vpop.permute.xlu2 %556 }
 0x392   : > { %v560_v34 = vsel %vm406_vm3, %v550_v32, %v557_v33 }
 0x393   : > { %638 = vmatmul.bf16.vlgmr.msra.gmra.mxu3 %v560_v34 }
 0x416   : > { %v639_v36 = vpop.f32.mrf.mxu3 }
 0x417   : > { %v640_v37 = vadd.f32 %v896_v35, %v639_v36 }
 0x419   : > { %644 = vst.msk [vmem:[%s282_s15] sm:$0xff] %vm384_vm1, %v640_v37 }
 0x41e   : > { %v641_v38 = vpop.f32.mrf.mxu3 }
 0x41f   : > { %v642_v39 = vadd.f32 %v896_v35, %v641_v38 }
 0x421   : > { %645 = vst.msk [vmem:[%s282_s15 + $0x8] sm:$0xff] %vm384_vm1, %v642_v39 }
 0x422   : > { %940 = shalt.err (!%p937_p5)
}
 0x423   : > { %s994_s28 = smov 128   ;;  %s995_s18 = smov 8  }
 0x424   : > { %838 = dma.vmem_to_hbm [thread:$0]  (%p1071_p4), %s662_s16, 256, %s664_s17, %s647_s19, %s994_s28, %s994_s28, %s995_s18  }
 0x425 PF: > { %p844_p6 = scmp.ge.s32.totalorder %s991_s26, 2  ;;  %s678_s13 = sand.u32 1, %s971_s21  }
 0x426   : > { %s679_s14 = scalar_lea.sflag [#allocation4], %s678_s13 }
 0x427   : > { %p841_p7 = pnand %p844_p6, %p1078_p8 }
 0x429   : > { %p842_p9 = pneg %p841_p7 }
 0x42b   : > { %966 = dma.done.wait (%p842_p9), %s679_s14, 256  }
 0x42c   : > { %968 = vsyncadd (%p842_p9), %s679_s14, 4294967040  ;;  %s19_s26 = sadd.s32 1, %s991_s26   ;;  %s1213_s21 = smov %s975_s22 }
 0x42d   : > { %p16_p10 = scmp.ge.s32.totalorder %s19_s26, 4   ;;  %s1214_s22 = smov %s979_s23 }
 0x42e   : > { %s1215_s23 = smov %s1084_s10  ;;  %s1216_s24 = smov %s987_s25 }
 0x42f   : > { %s1217_s25 = smov %s1219_s29  ;;  %18 = sbr.rel (!%p16_p10) target bundleno = 4 (0x4), region = 92 }
 0x434   :  { %685 = vsyncpa [#allocation4], 1 }
 0x435   :  { %687 = vsyncpa [#allocation4 + $0x1], 1 }

</bundles_post_ra>
